<compile_context>
chip_gen: v6e
topology: v6e:2x2x1
jax: 0.10.0
libtpu: 0.0.40
codegen_flags: <defaults>
</compile_context>

<pallas_src>
import functools
import math

import jax
import jax.numpy as jnp
from jax.experimental import pallas as pl
from jax.experimental.pallas import tpu as pltpu


def _ada_layer_norm_kernel(ids_ref, x_ref, scale_ref, shift_ref, o_ref, *, eps):
    # x_ref:     (tile_rows, D)
    # scale_ref: (1, 1, D)  -- row `ids[0]` of the scale embedding table
    # shift_ref: (1, 1, D)  -- row `ids[0]` of the shift embedding table
    del ids_ref  # consumed by the index_maps only

    x = x_ref[...].astype(jnp.float32)

    # LayerNorm over the last dim (biased variance, eps inside rsqrt), matching
    # torch.nn.functional.layer_norm(x, (D,), eps=eps) without elementwise affine.
    mean = jnp.mean(x, axis=-1, keepdims=True)
    xc = x - mean
    var = jnp.mean(xc * xc, axis=-1, keepdims=True)
    y = xc * jax.lax.rsqrt(var + eps)

    scale = scale_ref[0].astype(jnp.float32)  # (1, D) -> broadcasts over rows
    shift = shift_ref[0].astype(jnp.float32)
    o_ref[...] = (y * scale + shift).astype(o_ref.dtype)


def _sublane(itemsize: int) -> int:
    # Rows per vreg along the sublane axis: 8 @ 32-bit, 16 @ 16-bit, 32 @ 8-bit.
    return 8 * max(1, 4 // itemsize)


def _pick_tile_rows(total_rows: int, D: int, itemsize: int) -> int:
    sub = _sublane(itemsize)
    if total_rows <= sub:
        return total_rows  # full-extent block is always layout-legal
    # Target ~2 MiB per block (>= 512 rows for D up to ~1024 @ f32); the
    # kernel is HBM-bandwidth bound, so big contiguous tiles amortize the
    # ~0.35 us/step grid overhead.
    target_bytes = 2 * 1024 * 1024
    rows = min(total_rows, max(sub, target_bytes // max(1, D * itemsize)))
    rows = max(sub, (rows // sub) * sub)
    # Prefer a divisor of total_rows (even grid across cores); otherwise the
    # partial last block is handled by Pallas (masked writeback).
    r = rows
    for _ in range(64):
        if total_rows % r == 0:
            return r
        r -= sub
        if r < sub:
            break
    return rows


def ada_layer_norm(x, cond_embedding_id, scale_weight, shift_weight,
                   *, eps=1e-6, tile_rows=None):
    """x: (..., D); cond_embedding_id: (1,) int; *_weight: (num_embeddings, D)."""
    orig_shape = x.shape
    D = orig_shape[-1]
    rows = math.prod(orig_shape[:-1])
    N = scale_weight.shape[0]
    itemsize = jnp.dtype(x.dtype).itemsize
    sub = _sublane(itemsize)

    if tile_rows is None:
        tile_rows = _pick_tile_rows(rows, D, itemsize)
    if tile_rows != rows:
        assert tile_rows % sub == 0, (
            f"tile_rows={tile_rows} must be a multiple of {sub} for dtype "
            f"{x.dtype} (or equal to the total row count {rows})")
    assert 0 < tile_rows <= rows

    x2 = x.reshape(rows, D)
    ids = cond_embedding_id.astype(jnp.int32)
    # Tables reshaped to (N, 1, D) so the per-row block (1, 1, D) satisfies the
    # TPU (8, 128)-or-full-dim tiling rule on the last two dims.
    scale_w = scale_weight.reshape(N, 1, D)
    shift_w = shift_weight.reshape(N, 1, D)

    grid = (pl.cdiv(rows, tile_rows),)

    # Explicit VMEM budget: double-buffered in/out blocks + f32 temps + slack.
    block_bytes = tile_rows * D * itemsize
    f32_bytes = tile_rows * D * 4
    vmem_limit = int(min(96 << 20,
                         max(16 << 20, 4 * block_bytes + 6 * f32_bytes + (2 << 20))))

    # Pure bandwidth-bound op: read x once, write out once; ~8 flops/element.
    cost = pl.CostEstimate(
        flops=8 * rows * D,
        transcendentals=rows,
        bytes_accessed=2 * rows * D * itemsize
        + 2 * D * jnp.dtype(scale_weight.dtype).itemsize,
    )

    kernel = functools.partial(_ada_layer_norm_kernel, eps=eps)

    out2 = pl.pallas_call(
        kernel,
        out_shape=jax.ShapeDtypeStruct((rows, D), x.dtype),
        grid_spec=pltpu.PrefetchScalarGridSpec(
            num_scalar_prefetch=1,  # ids land in SMEM, visible to index_maps
            grid=grid,
            in_specs=[
                pl.BlockSpec((tile_rows, D), lambda r, ids: (r, 0)),
                pl.BlockSpec((1, 1, D), lambda r, ids: (ids[0], 0, 0)),
                pl.BlockSpec((1, 1, D), lambda r, ids: (ids[0], 0, 0)),
            ],
            out_specs=pl.BlockSpec((tile_rows, D), lambda r, ids: (r, 0)),
        ),
        compiler_params=pltpu.CompilerParams(
            dimension_semantics=("parallel",),
            vmem_limit_bytes=vmem_limit,
        ),
        cost_estimate=cost,
    )(ids, x2, scale_w, shift_w)

    return out2.reshape(orig_shape)


def _reference(x, ids, scale_w, shift_w, eps):
    scale = scale_w[ids]  # (1, D)
    shift = shift_w[ids]
    mean = jnp.mean(x, axis=-1, keepdims=True)
    var = jnp.mean((x - mean) ** 2, axis=-1, keepdims=True)
    y = (x - mean) / jnp.sqrt(var + eps)
    return y * scale + shift


if __name__ == "__main__":
    num_embeddings, embedding_dim = 4, 32
    B, T, D = 2, 8, embedding_dim
    eps = 1e-6

    key = jax.random.PRNGKey(0)
    kx, ks, kb = jax.random.split(key, 3)

    x = jax.random.normal(kx, (B, T, D), dtype=jnp.float32)
    cond_embedding_id = jnp.array([2], dtype=jnp.int32)

    # Module __init__ uses ones_(scale.weight) / zeros_(shift.weight); add a
    # small deterministic perturbation so the gather + affine path is exercised.
    scale_weight = jnp.ones((num_embeddings, embedding_dim), jnp.float32) \
        + 0.1 * jax.random.normal(ks, (num_embeddings, embedding_dim), jnp.float32)
    shift_weight = 0.1 * jax.random.normal(kb, (num_embeddings, embedding_dim), jnp.float32)

    out = ada_layer_norm(x, cond_embedding_id, scale_weight, shift_weight, eps=eps)
    out = jax.block_until_ready(out)

    ref = _reference(x, cond_embedding_id, scale_weight, shift_weight, eps)
    assert out.shape == (B, T, D)
    assert jnp.allclose(out, ref, atol=1e-5, rtol=1e-5), \
        f"max err {jnp.max(jnp.abs(out - ref))}"
    print("KERNEL_OK")
</pallas_src>

<mosaic_0001>
module attributes {stable_mosaic.version = 11 : i64} {
  func.func @_ada_layer_norm_kernel(%arg0: i32, %arg1: memref<1xi32, #tpu.memory_space<smem>>, %arg2: memref<16x32xf32, #tpu.memory_space<vmem>>, %arg3: memref<1x1x32xf32, #tpu.memory_space<vmem>>, %arg4: memref<1x1x32xf32, #tpu.memory_space<vmem>>, %arg5: memref<16x32xf32, #tpu.memory_space<vmem>>) attributes {dimension_semantics = [#tpu.dimension_semantics<parallel>], iteration_bounds = array<i64: 1>, scalar_prefetch = 1 : i64, scratch_operands = 0 : i64, tpu.core_type = #tpu.core_type<tc>, window_params = [{transform_indices = @transform_0, window_bounds = array<i64: 16, 32>}, {transform_indices = @transform_1, window_bounds = array<i64: 1, 1, 32>}, {transform_indices = @transform_2, window_bounds = array<i64: 1, 1, 32>}, {transform_indices = @transform_3, window_bounds = array<i64: 16, 32>}]} {
    %c0 = arith.constant 0 : index
    %c0_0 = arith.constant 0 : index
    %0 = vector.load %arg2[%c0, %c0_0] : memref<16x32xf32, #tpu.memory_space<vmem>>, vector<16x32xf32>
    %cst = arith.constant dense<0.000000e+00> : vector<16xf32>
    %1 = vector.multi_reduction <add>, %0, %cst [1] : vector<16x32xf32> to vector<16xf32>
    %2 = vector.shape_cast %1 : vector<16xf32> to vector<16x1xf32>
    %cst_1 = arith.constant 3.200000e+01 : f32
    %3 = vector.broadcast %cst_1 : f32 to vector<16x1xf32>
    %4 = arith.divf %2, %3 : vector<16x1xf32>
    %5 = vector.broadcast %4 : vector<16x1xf32> to vector<16x32xf32>
    %6 = arith.subf %0, %5 : vector<16x32xf32>
    %7 = arith.mulf %6, %6 : vector<16x32xf32>
    %cst_2 = arith.constant dense<0.000000e+00> : vector<16xf32>
    %8 = vector.multi_reduction <add>, %7, %cst_2 [1] : vector<16x32xf32> to vector<16xf32>
    %9 = vector.shape_cast %8 : vector<16xf32> to vector<16x1xf32>
    %cst_3 = arith.constant 3.200000e+01 : f32
    %10 = vector.broadcast %cst_3 : f32 to vector<16x1xf32>
    %11 = arith.divf %9, %10 : vector<16x1xf32>
    %cst_4 = arith.constant 9.99999997E-7 : f32
    %12 = vector.broadcast %cst_4 : f32 to vector<16x1xf32>
    %13 = arith.addf %11, %12 : vector<16x1xf32>
    %14 = math.rsqrt %13 : vector<16x1xf32>
    %15 = vector.broadcast %14 : vector<16x1xf32> to vector<16x32xf32>
    %16 = arith.mulf %6, %15 : vector<16x32xf32>
    %c0_5 = arith.constant 0 : index
    %c0_6 = arith.constant 0 : index
    %c0_7 = arith.constant 0 : index
    %17 = vector.load %arg3[%c0_5, %c0_6, %c0_7] : memref<1x1x32xf32, #tpu.memory_space<vmem>>, vector<1x1x32xf32>
    %18 = vector.shape_cast %17 : vector<1x1x32xf32> to vector<1x32xf32>
    %c0_8 = arith.constant 0 : index
    %c0_9 = arith.constant 0 : index
    %c0_10 = arith.constant 0 : index
    %19 = vector.load %arg4[%c0_8, %c0_9, %c0_10] : memref<1x1x32xf32, #tpu.memory_space<vmem>>, vector<1x1x32xf32>
    %20 = vector.shape_cast %19 : vector<1x1x32xf32> to vector<1x32xf32>
    %21 = vector.broadcast %18 : vector<1x32xf32> to vector<16x32xf32>
    %22 = arith.mulf %16, %21 : vector<16x32xf32>
    %23 = vector.broadcast %20 : vector<1x32xf32> to vector<16x32xf32>
    %24 = arith.addf %22, %23 : vector<16x32xf32>
    %c0_11 = arith.constant 0 : index
    %c0_12 = arith.constant 0 : index
    %25 = vector.load %arg5[%c0_11, %c0_12] : memref<16x32xf32, #tpu.memory_space<vmem>>, vector<16x32xf32>
    tpu.vector_store %arg5[%c0_11, %c0_12], %24 {strides = array<i32>} : memref<16x32xf32, #tpu.memory_space<vmem>>, vector<16x32xf32>,
    return
  }
  func.func @transform_0(%arg0: i32, %arg1: memref<1xi32, #tpu.memory_space<smem>>) -> (i32, i32) {
    %c0_i32 = arith.constant 0 : i32
    %c0_i32_0 = arith.constant 0 : i32
    return %arg0, %c0_i32 : i32, i32
  }
  func.func @transform_1(%arg0: i32, %arg1: memref<1xi32, #tpu.memory_space<smem>>) -> (i32, i32, i32) {
    %c0 = arith.constant 0 : index
    %0 = memref.load %arg1[%c0] : memref<1xi32, #tpu.memory_space<smem>>
    %c0_i32 = arith.constant 0 : i32
    %c0_i32_0 = arith.constant 0 : i32
    %c0_i32_1 = arith.constant 0 : i32
    return %0, %c0_i32, %c0_i32_0 : i32, i32, i32
  }
  func.func @transform_2(%arg0: i32, %arg1: memref<1xi32, #tpu.memory_space<smem>>) -> (i32, i32, i32) {
    %c0 = arith.constant 0 : index
    %0 = memref.load %arg1[%c0] : memref<1xi32, #tpu.memory_space<smem>>
    %c0_i32 = arith.constant 0 : i32
    %c0_i32_0 = arith.constant 0 : i32
    %c0_i32_1 = arith.constant 0 : i32
    return %0, %c0_i32, %c0_i32_0 : i32, i32, i32
  }
  func.func @transform_3(%arg0: i32, %arg1: memref<1xi32, #tpu.memory_space<smem>>) -> (i32, i32) {
    %c0_i32 = arith.constant 0 : i32
    %c0_i32_0 = arith.constant 0 : i32
    return %arg0, %c0_i32 : i32, i32
  }
}

</mosaic_0001>

<bundles_post_ra>
// kernel: tpu_custom_call.1
= control target key start
LH: loop header
LB: loop body
LE: loop exit
PB: predicated region body
PF: predicated region fallthrough
CT: control target
= control target key end

     0   :  { %10 = vsyncpa [#allocation5], 0  ;;  %s283_s0 = inlined_call_operand.<no memory space> [shape: s32[1], index: 0, kind: input, shape index: {}]   ;;  %s284_s1 = inlined_call_operand.hbm [shape: f32[16,32], index: 1, kind: input, shape index: {}]   ;;  %s285_s2 = inlined_call_operand.hbm [shape: f32[4,1,32], index: 2, kind: input, shape index: {}]   ;;  %s286_s3 = inlined_call_operand.vmem [shape: f32[4,1,32], index: 3, kind: input, shape index: {}]   ;;  %s287_s4 = inlined_call_operand.hbm [shape: f32[16,32], index: 4, kind: output, shape index: {}]  }
   0x1   :  { %11 = vsyncpa [#allocation8], 0 }
   0x2   :  { %12 = vsyncpa [#allocation6], 0  ;;  %s214_s15 = smov [#allocation4]   ;;  %s134_s19 = sshll.u32 %s283_s0, 4 }
   0x3   :  { %s18_s16 = sshll.u32 %s214_s15, 4  ;;  %s19_s16 = int_to_ptr.vmem [resolvable:$true] %s18_s16 }
   0x4   :  { %s154_s20 = scalar_lea.vmem %s19_s16, 256  ;;  %p159_p1 = scmp.lt.s32.totalorder %s19_s16, %s19_s16 }
   0x5   :  { %p155_p0 = scmp.ne.s32.totalorder %s19_s16, %s154_s20  ;;  %p160_p2 = scmp.lt.s32.totalorder %s154_s20, %s154_s20 }
   0x7   :  { %p161_p3 = por %p160_p2, %p159_p1 }
   0x9   :  { %p162_p4 = pnand %p161_p3, %p155_p0 }
   0xb   :  { %165 = shalt.err (!%p162_p4)
}
   0xc   :  { %s215_s21 = smov 128   ;;  %s216_s22 = smov 8  }
   0xd   :  { %24 = dma.hbm_to_vmem [thread:$0]  %s284_s1, 256, %s19_s16, [#allocation5], %s215_s21, %s215_s21, %s216_s22  }
   0xe   :  { %s32_s27 = scalar_lea.hbm %s285_s2, %s134_s19  ;;  %s217_s28 = smov [#allocation7]  }
   0xf   :  { %s34_s29 = sshll.u32 %s217_s28, 4  ;;  %s166_s30 = scalar_lea.hbm %s32_s27, 16  ;;  %s35_s29 = int_to_ptr.vmem [resolvable:$true] %s34_s29 }
  0x10   :  { %p167_p5 = scmp.ne.s32.totalorder %s32_s27, %s166_s30  ;;  %s168_s7 = scalar_lea.hbm %s285_s2, 64 }
  0x11   :  { %p169_p6 = scmp.lt.s32.totalorder %s32_s27, %s285_s2  ;;  %p170_p7 = scmp.lt.s32.totalorder %s168_s7, %s166_s30 }
  0x13   :  { %p171_p8 = por %p170_p7, %p169_p6 }
  0x15   :  { %p172_p9 = pnand %p171_p8, %p167_p5 }
  0x17   :  { %175 = shalt.err (!%p172_p9)
}
  0x18   :  { %s176_s1 = scalar_lea.vmem %s35_s29, 16  ;;  %s180_s10 = scalar_lea.vmem %s35_s29, 32 }
  0x19   :  { %p177_p10 = scmp.ne.s32.totalorder %s35_s29, %s176_s1  ;;  %p181_p11 = scmp.lt.s32.totalorder %s35_s29, %s35_s29 }
  0x1a   :  { %p182_p12 = scmp.lt.s32.totalorder %s180_s10, %s176_s1 }
  0x1c   :  { %p183_p13 = por %p182_p12, %p181_p11 }
  0x1e   :  { %p184_p0 = pnand %p183_p13, %p177_p10 }
  0x20   :  { %187 = shalt.err (!%p184_p0)
}
  0x21   :  { %37 = dma.hbm_to_vmem [thread:$0]  %s32_s27, 16, %s35_s29, [#allocation8]  }
  0x22   :  { %208 = dma.done.wait [#allocation5], 256  }
  0x23   :  { %209 = vsyncadd [#allocation5], 4294967040 }
  0x24   :  { %210 = dma.done.wait [#allocation8], 16  }
  0x25   :  { %211 = vsyncadd [#allocation8], 4294967280  ;;  %vm63_vm0 = vcmask 261120   ;;  %v61_v0 = vld [vmem:[#allocation4] sm:$0xff]  ;;  %v62_v1 = vld [vmem:[#allocation4 + $0x8] sm:$0xff]  ;;  %p57_p1 = scmp.lt.s32.totalorder %s283_s0, 3 }
  0x26   :  { %v64_v2 = vsel %vm63_vm0, %v61_v0, 0.0  ;;  %v67_v3 = vsel %vm63_vm0, %v62_v1, 0.0  ;;  %v135_v21 = vld [vmem:[#allocation7] ss:$0 sm:$0xff]  ;;  %s218_s17 = smov [#allocation9]  }
  0x27   :  { %65 = vadd.xlane.f32.xlu0 %v64_v2  ;;  %s289_s0 = smov (!%p57_p1, %s283_s0), 3  ;;  %s116_s18 = sshll.u32 %s218_s17, 4  ;;  %s117_s18 = int_to_ptr.vmem [resolvable:$true] %s116_s18 }
  0x28   :  { %s59_s16 = scalar_lea.vmem %s286_s3, %s289_s0  ;;  %s188_s19 = scalar_lea.vmem %s117_s18, 256 }
  0x29   :  { %v136_v23 = vld [vmem:[%s59_s16] ss:$0 sm:$0xff]  ;;  %p189_p2 = scmp.ne.s32.totalorder %s117_s18, %s188_s19  ;;  %p193_p3 = scmp.lt.s32.totalorder %s117_s18, %s117_s18 }
  0x2a   :  { %p194_p4 = scmp.lt.s32.totalorder %s188_s19, %s188_s19 }
  0x2b   :  { %68 = vadd.xlane.f32.xlu0 %v67_v3 }
  0x2c   :  { %p195_p5 = por %p194_p4, %p193_p3 }
  0x2e   :  { %p196_p6 = pnand %p195_p5, %p189_p2 }
  0xb0   :  { %v66_v4 = vpop.xlane.xlu0 %65 }
  0xb1   :  { %v71_v5 = vmul.f32 0.03125, %v66_v4 }
  0xb3   :  { %v73_v6 = vsub.f32 %v61_v0, %v71_v5 }
  0xb4   :  { %v69_v7 = vpop.xlane.xlu0 %68 }
  0xb5   :  { %v72_v8 = vmul.f32 0.03125, %v69_v7  ;;  %v75_v9 = vmul.f32 %v73_v6, %v73_v6 }
  0xb7   :  { %v74_v10 = vsub.f32 %v62_v1, %v72_v8  ;;  %v77_v11 = vsel %vm63_vm0, %v75_v9, 0.0 }
  0xb8   :  { %78 = vadd.xlane.f32.xlu1 %v77_v11 }
  0xb9   :  { %v76_v12 = vmul.f32 %v74_v10, %v74_v10 }
  0xbb   :  { %v80_v13 = vsel %vm63_vm0, %v76_v12, 0.0 }
  0xbc   :  { %81 = vadd.xlane.f32.xlu1 %v80_v13 }
 0x141   :  { %v79_v14 = vpop.xlane.xlu1 %78 }
 0x142   :  { %v83_v15 = vmul.f32 0.03125, %v79_v14 }
 0x144   :  { %v85_v16 = vadd.f32 1e-06, %v83_v15 }
 0x145   :  { %v82_v17 = vpop.xlane.xlu1 %81 }
 0x146   :  { %142 = vrsqrt.f32 %v85_v16  ;;  %v84_v18 = vmul.f32 0.03125, %v82_v17 }
 0x148   :  { %v86_v19 = vadd.f32 1e-06, %v84_v18 }
 0x14a   :  { %144 = vrsqrt.f32 %v86_v19 }
 0x153   :  { %v143_v20 = vpop.eup %142 }
 0x154   :  { %v89_v22 = vmul.f32 %v143_v20, %v73_v6 }
 0x156   :  { %v99_v24 = vmul.f32 %v135_v21, %v89_v22 }
 0x157   :  { %v145_v25 = vpop.eup %144 }
 0x158   :  { %v90_v26 = vmul.f32 %v145_v25, %v74_v10  ;;  %v107_v27 = vadd.f32 %v136_v23, %v99_v24 }
 0x15a   :  { %v100_v28 = vmul.f32 %v135_v21, %v90_v26  ;;  %109 = vst.msk [vmem:[#allocation9] sm:$0xff] %vm63_vm0, %v107_v27 }
 0x15c   :  { %v108_v29 = vadd.f32 %v136_v23, %v100_v28 }
 0x15e   :  { %110 = vst.msk [vmem:[#allocation9 + $0x8] sm:$0xff] %vm63_vm0, %v108_v29 }
 0x15f   :  { %199 = shalt.err (!%p196_p6)
}
 0x160   :  { %122 = dma.vmem_to_hbm [thread:$0]  %s117_s18, 256, %s287_s4, [#allocation6], %s215_s21, %s215_s21, %s216_s22  }
 0x161   :  { %212 = dma.done.wait [#allocation6], 256  }
 0x162   :  { %213 = vsyncadd [#allocation6], 4294967040 }
 0x163   :  { %126 = vsyncpa [#allocation5], 1 }
 0x164   :  { %127 = vsyncpa [#allocation8], 1 }
 0x165   :  { %128 = vsyncpa [#allocation6], 1 }

</bundles_post_ra>
